<compile_context>
chip_gen: v7x
topology: tpu7x:2x2x1
jax: 0.10.0
libtpu: 0.0.40
codegen_flags: <defaults>
</compile_context>

<pallas_src>
import math
from collections import namedtuple

import jax
import jax.numpy as jnp
from jax.experimental import pallas as pl
from jax.experimental.pallas import tpu as pltpu

_LANES = 128
_SUBLANES = 8
# Per-stream VMEM block budget (lane-padded layout bytes). 4096 rows x 128
# lanes x f32 = 2 MiB; large blocks amortize the ~0.35us/grid-step overhead.
_TARGET_BLOCK_BYTES = 2 * 1024 * 1024

_Plan = namedtuple("_Plan", "rows cols tr n_tiles acc_rows ragged")


def _round_up(n, m):
    return ((n + m - 1) // m) * m


def _view_2d(x):
    """Free (no-copy) 2-D view of x. No pad, no concat, no dtype cast."""
    if x.size % _LANES == 0:
        return x.reshape(-1, _LANES)          # lane-dense slab
    if x.ndim >= 2:
        return x.reshape(-1, x.shape[-1])     # keep last dim (full-dim block)
    return x.reshape(1, -1)


def _plan(view, max_tile_rows=None):
    rows, cols = view.shape
    cols_pad = _round_up(cols, _LANES)
    budget = _TARGET_BLOCK_BYTES // (cols_pad * 4)
    budget = max(_SUBLANES, (budget // _SUBLANES) * _SUBLANES)
    if max_tile_rows is not None:
        budget = min(budget,
                     max(_SUBLANES, (max_tile_rows // _SUBLANES) * _SUBLANES))
    if rows <= budget:
        tr, n_tiles = rows, 1
    else:
        tr = budget
        n_tiles = -(-rows // tr)
    acc_rows = _SUBLANES if tr % _SUBLANES == 0 else tr
    ragged = (rows % tr) != 0
    return _Plan(rows, cols, tr, n_tiles, acc_rows, ragged)


def _index_map(n_tiles, grid_size):
    """Row-block index map; clamps to the last valid tile when this input has
    fewer tiles than the shared grid (kernel skips accumulation there)."""
    if n_tiles == grid_size:
        return lambda i: (i, 0)
    last = n_tiles - 1
    return lambda i: (jnp.minimum(i, last), 0)


def _build_kernel(lik_plans, img_plan, grid_size, bpp_scale, mse_scale, ld_scale):
    n_lik = len(lik_plans)

    def kernel(*refs):
        lik_refs = refs[:n_lik]
        xhat_ref = refs[n_lik]
        tgt_ref = refs[n_lik + 1]
        out_ref = refs[n_lik + 2]
        lik_accs = refs[n_lik + 3:n_lik + 3 + n_lik]
        sse_acc = refs[n_lik + 3 + n_lik]

        i = pl.program_id(0)

        @pl.when(i == 0)
        def _init():
            for acc in lik_accs:
                acc[...] = jnp.zeros_like(acc)
            sse_acc[...] = jnp.zeros_like(sse_acc)

        def _accum(acc_ref, vals, plan):
            # Mask rows of the (possibly ragged) last tile. Static no-op when
            # the tile size divides the row count.
            if plan.ragged:
                row = jax.lax.broadcasted_iota(jnp.int32, vals.shape, 0)
                vals = jnp.where(i * plan.tr + row < plan.rows, vals, 0.0)
            if plan.tr == plan.acc_rows:
                acc_ref[...] += vals
            else:
                # Leading-axis partial reduce: pure VALU adds into a single
                # vreg-group accumulator; XLU reduce deferred to finalize.
                g = plan.tr // plan.acc_rows
                acc_ref[...] += vals.reshape(g, plan.acc_rows,
                                             plan.cols).sum(axis=0)

        for k, plan in enumerate(lik_plans):
            def _do_lik(k=k, plan=plan):
                x = lik_refs[k][...].astype(jnp.float32)   # cast in-kernel
                _accum(lik_accs[k], jnp.log(x), plan)      # EUP log + VPU add
            if plan.n_tiles == grid_size:
                _do_lik()
            else:
                pl.when(i < plan.n_tiles)(_do_lik)

        def _do_sse():
            d = xhat_ref[...].astype(jnp.float32) - tgt_ref[...].astype(jnp.float32)
            _accum(sse_acc, d * d, img_plan)
        if img_plan.n_tiles == grid_size:
            _do_sse()
        else:
            pl.when(i < img_plan.n_tiles)(_do_sse)

        @pl.when(i == pl.num_programs(0) - 1)
        def _finalize():
            # Single cross-lane reduce + scalar (SMEM) stores, once per call.
            logsum = jnp.float32(0.0)
            for acc in lik_accs:
                logsum = logsum + jnp.sum(acc[...])
            sse = jnp.sum(sse_acc[...])
            bpp = logsum * bpp_scale
            mse = sse * mse_scale
            out_ref[0] = bpp
            out_ref[1] = mse
            out_ref[2] = ld_scale * mse + bpp

    return kernel


def rate_distortion_loss(output, target, lmbda=0.01, metric="mse",
                         return_type="all", max_tile_rows=None):
    """Forward pass of RateDistortionLoss (metric='mse') as one fused Pallas
    streaming-reduction kernel producing bpp_loss / mse_loss / loss."""
    if metric != "mse":
        # TODO(synk): 'ms-ssim' metric branch not implemented as a Pallas kernel.
        raise NotImplementedError(
            "only the 'mse' metric branch is implemented as a Pallas kernel")

    x_hat = output["x_hat"]
    N, _, H, W = target.shape
    num_pixels = N * H * W

    lik_views = [_view_2d(l) for l in output["likelihoods"].values()]
    xhat_view = _view_2d(x_hat)
    tgt_view = _view_2d(target)

    lik_plans = [_plan(v, max_tile_rows) for v in lik_views]
    img_plan = _plan(xhat_view, max_tile_rows)

    grid_size = max([p.n_tiles for p in lik_plans] + [img_plan.n_tiles])

    # num_pixels is shared by every likelihoods tensor, so
    # sum_k(log(l_k).sum()) / (-log2 * num_pixels) == sum of per-tensor bpp.
    bpp_scale = -1.0 / (math.log(2.0) * num_pixels)
    mse_scale = 1.0 / float(x_hat.size)           # nn.MSELoss() == mean
    ld_scale = float(lmbda) * (255.0 ** 2)

    kernel = _build_kernel(lik_plans, img_plan, grid_size,
                           bpp_scale, mse_scale, ld_scale)

    in_specs = [pl.BlockSpec((p.tr, p.cols), _index_map(p.n_tiles, grid_size))
                for p in lik_plans]
    in_specs += [pl.BlockSpec((img_plan.tr, img_plan.cols),
                              _index_map(img_plan.n_tiles, grid_size))] * 2

    scratch = [pltpu.VMEM((p.acc_rows, p.cols), jnp.float32) for p in lik_plans]
    scratch.append(pltpu.VMEM((img_plan.acc_rows, img_plan.cols), jnp.float32))

    # Explicit scoped-VMEM budget: double-buffered lane-padded input blocks
    # + accumulators, with headroom (keeps v5e's 16 MiB default from binding).
    need = 0
    for p, v in zip(lik_plans + [img_plan, img_plan],
                    lik_views + [xhat_view, tgt_view]):
        need += 2 * _round_up(p.tr, _SUBLANES) * _round_up(p.cols, _LANES) * v.dtype.itemsize
    for p in lik_plans + [img_plan]:
        need += _round_up(p.acc_rows, _SUBLANES) * _round_up(p.cols, _LANES) * 4
    vmem_limit = int(min(max(2 * need + (4 << 20), 16 << 20), 40 << 20))

    out = pl.pallas_call(
        kernel,
        out_shape=jax.ShapeDtypeStruct((3,), jnp.float32),
        grid_spec=pltpu.PrefetchScalarGridSpec(
            num_scalar_prefetch=0,
            grid=(grid_size,),
            in_specs=in_specs,
            out_specs=pl.BlockSpec(memory_space=pltpu.MemorySpace.SMEM),
            scratch_shapes=scratch,
        ),
        compiler_params=pltpu.CompilerParams(
            dimension_semantics=("arbitrary",),
            vmem_limit_bytes=vmem_limit),
    )(*lik_views, xhat_view, tgt_view)

    result = {"bpp_loss": out[0], "mse_loss": out[1], "loss": out[2]}
    if return_type == "all":
        return result
    return result[return_type]


# ---------------------------------------------------------------------------
# Plain-JAX reference for correctness checks
# ---------------------------------------------------------------------------
def _reference(output, target, lmbda=0.01):
    N, _, H, W = target.shape
    num_pixels = N * H * W
    bpp = sum(jnp.sum(jnp.log(l)) / (-math.log(2) * num_pixels)
              for l in output["likelihoods"].values())
    mse = jnp.mean((output["x_hat"] - target) ** 2)
    return {"bpp_loss": bpp, "mse_loss": mse,
            "loss": lmbda * (255.0 ** 2) * mse + bpp}


if __name__ == "__main__":
    key = jax.random.PRNGKey(0)
    k1, k2, k3, k4 = jax.random.split(key, 4)

    # Small shapes consistent with a learned-compression forward pass.
    N, C, H, W = 2, 3, 16, 16
    target = jax.random.uniform(k1, (N, C, H, W), jnp.float32)
    x_hat = jax.random.uniform(k2, (N, C, H, W), jnp.float32)
    # Likelihoods in (0, 1]: two entropy bottlenecks ('y' and 'z').
    lik_y = jax.random.uniform(k3, (N, 8, H // 4, W // 4), jnp.float32,
                               minval=1e-3, maxval=1.0)
    lik_z = jax.random.uniform(k4, (N, 4, H // 8, W // 8), jnp.float32,
                               minval=1e-3, maxval=1.0)

    output = {"x_hat": x_hat, "likelihoods": {"y": lik_y, "z": lik_z}}
    ref = _reference(output, target, lmbda=0.01)

    # 1) Default tiling (single tile per input; exercises the vreg-group
    #    partial-reduce path on the non-128-wide likelihood tensor).
    result = rate_distortion_loss(output, target, lmbda=0.01, metric="mse")
    result = jax.tree_util.tree_map(jax.block_until_ready, result)
    for name in ("bpp_loss", "mse_loss", "loss"):
        assert jnp.allclose(result[name], ref[name], rtol=1e-5, atol=1e-5), (
            name, result[name], ref[name])

    # 2) Forced small tiles: exercises the multi-tile grid, clamped index maps
    #    and the ragged-tail iota mask path.
    result2 = rate_distortion_loss(output, target, lmbda=0.01, metric="mse",
                                   max_tile_rows=8)
    result2 = jax.tree_util.tree_map(jax.block_until_ready, result2)
    for name in ("bpp_loss", "mse_loss", "loss"):
        assert jnp.allclose(result2[name], ref[name], rtol=1e-5, atol=1e-5), (
            name, result2[name], ref[name])

    print("KERNEL_OK")
</pallas_src>

<mosaic_0001>
module attributes {stable_mosaic.version = 11 : i64} {
  func.func @kernel(%arg0: i32, %arg1: memref<2x128xf32, #tpu.memory_space<vmem>>, %arg2: memref<16x2xf32, #tpu.memory_space<vmem>>, %arg3: memref<12x128xf32, #tpu.memory_space<vmem>>, %arg4: memref<12x128xf32, #tpu.memory_space<vmem>>, %arg5: memref<3xf32, #tpu.memory_space<smem>>, %arg6: memref<2x128xf32, #tpu.memory_space<vmem>>, %arg7: memref<8x2xf32, #tpu.memory_space<vmem>>, %arg8: memref<12x128xf32, #tpu.memory_space<vmem>>) attributes {dimension_semantics = [#tpu.dimension_semantics<arbitrary>], iteration_bounds = array<i64: 1>, scalar_prefetch = 0 : i64, scratch_operands = 3 : i64, tpu.core_type = #tpu.core_type<tc>, window_params = [{transform_indices = @transform_0, window_bounds = array<i64: 2, 128>}, {transform_indices = @transform_1, window_bounds = array<i64: 16, 2>}, {transform_indices = @transform_2, window_bounds = array<i64: 12, 128>}, {transform_indices = @transform_3, window_bounds = array<i64: 12, 128>}, {transform_indices = @transform_4, window_bounds = array<i64: 3>}]} {
    %c0_i32 = arith.constant 0 : i32
    %0 = arith.cmpi eq, %arg0, %c0_i32 : i32
    %1 = arith.extui %0 : i1 to i32
    %c0_i32_0 = arith.constant 0 : i32
    %2 = arith.cmpi ne, %1, %c0_i32_0 : i32
    scf.if %2 {
      %cst_22 = arith.constant 0.000000e+00 : f32
      %25 = vector.broadcast %cst_22 : f32 to vector<2x128xf32>
      %c0_23 = arith.constant 0 : index
      %c0_24 = arith.constant 0 : index
      %26 = vector.load %arg6[%c0_23, %c0_24] : memref<2x128xf32, #tpu.memory_space<vmem>>, vector<2x128xf32>
      tpu.vector_store %arg6[%c0_23, %c0_24], %25 {strides = array<i32>} : memref<2x128xf32, #tpu.memory_space<vmem>>, vector<2x128xf32>,
      %cst_25 = arith.constant 0.000000e+00 : f32
      %27 = vector.broadcast %cst_25 : f32 to vector<8x2xf32>
      %c0_26 = arith.constant 0 : index
      %c0_27 = arith.constant 0 : index
      %28 = vector.load %arg7[%c0_26, %c0_27] : memref<8x2xf32, #tpu.memory_space<vmem>>, vector<8x2xf32>
      tpu.vector_store %arg7[%c0_26, %c0_27], %27 {strides = array<i32>} : memref<8x2xf32, #tpu.memory_space<vmem>>, vector<8x2xf32>,
      %cst_28 = arith.constant 0.000000e+00 : f32
      %29 = vector.broadcast %cst_28 : f32 to vector<12x128xf32>
      %c0_29 = arith.constant 0 : index
      %c0_30 = arith.constant 0 : index
      %30 = vector.load %arg8[%c0_29, %c0_30] : memref<12x128xf32, #tpu.memory_space<vmem>>, vector<12x128xf32>
      tpu.vector_store %arg8[%c0_29, %c0_30], %29 {strides = array<i32>} : memref<12x128xf32, #tpu.memory_space<vmem>>, vector<12x128xf32>,
    } else {
    }
    %c0 = arith.constant 0 : index
    %c0_1 = arith.constant 0 : index
    %3 = vector.load %arg1[%c0, %c0_1] : memref<2x128xf32, #tpu.memory_space<vmem>>, vector<2x128xf32>
    %4 = math.log %3 : vector<2x128xf32>
    %c0_2 = arith.constant 0 : index
    %c0_3 = arith.constant 0 : index
    %5 = vector.load %arg6[%c0_2, %c0_3] : memref<2x128xf32, #tpu.memory_space<vmem>>, vector<2x128xf32>
    %6 = arith.addf %5, %4 : vector<2x128xf32>
    %c0_4 = arith.constant 0 : index
    %c0_5 = arith.constant 0 : index
    %7 = vector.load %arg6[%c0_4, %c0_5] : memref<2x128xf32, #tpu.memory_space<vmem>>, vector<2x128xf32>
    tpu.vector_store %arg6[%c0_4, %c0_5], %6 {strides = array<i32>} : memref<2x128xf32, #tpu.memory_space<vmem>>, vector<2x128xf32>,
    %c0_6 = arith.constant 0 : index
    %c0_7 = arith.constant 0 : index
    %8 = vector.load %arg2[%c0_6, %c0_7] : memref<16x2xf32, #tpu.memory_space<vmem>>, vector<16x2xf32>
    %9 = math.log %8 : vector<16x2xf32>
    %c0_8 = arith.constant 0 : index
    %c0_9 = arith.constant 0 : index
    %10 = vector.load %arg7[%c0_8, %c0_9] : memref<8x2xf32, #tpu.memory_space<vmem>>, vector<8x2xf32>
    %11 = vector.shape_cast %9 : vector<16x2xf32> to vector<2x8x2xf32>
    %cst = arith.constant dense<0.000000e+00> : vector<8x2xf32>
    %12 = vector.multi_reduction <add>, %11, %cst [0] : vector<2x8x2xf32> to vector<8x2xf32>
    %13 = arith.addf %10, %12 : vector<8x2xf32>
    %c0_10 = arith.constant 0 : index
    %c0_11 = arith.constant 0 : index
    %14 = vector.load %arg7[%c0_10, %c0_11] : memref<8x2xf32, #tpu.memory_space<vmem>>, vector<8x2xf32>
    tpu.vector_store %arg7[%c0_10, %c0_11], %13 {strides = array<i32>} : memref<8x2xf32, #tpu.memory_space<vmem>>, vector<8x2xf32>,
    %c0_12 = arith.constant 0 : index
    %c0_13 = arith.constant 0 : index
    %15 = vector.load %arg3[%c0_12, %c0_13] : memref<12x128xf32, #tpu.memory_space<vmem>>, vector<12x128xf32>
    %c0_14 = arith.constant 0 : index
    %c0_15 = arith.constant 0 : index
    %16 = vector.load %arg4[%c0_14, %c0_15] : memref<12x128xf32, #tpu.memory_space<vmem>>, vector<12x128xf32>
    %17 = arith.subf %15, %16 : vector<12x128xf32>
    %18 = arith.mulf %17, %17 : vector<12x128xf32>
    %c0_16 = arith.constant 0 : index
    %c0_17 = arith.constant 0 : index
    %19 = vector.load %arg8[%c0_16, %c0_17] : memref<12x128xf32, #tpu.memory_space<vmem>>, vector<12x128xf32>
    %20 = arith.addf %19, %18 : vector<12x128xf32>
    %c0_18 = arith.constant 0 : index
    %c0_19 = arith.constant 0 : index
    %21 = vector.load %arg8[%c0_18, %c0_19] : memref<12x128xf32, #tpu.memory_space<vmem>>, vector<12x128xf32>
    tpu.vector_store %arg8[%c0_18, %c0_19], %20 {strides = array<i32>} : memref<12x128xf32, #tpu.memory_space<vmem>>, vector<12x128xf32>,
    %c0_i32_20 = arith.constant 0 : i32
    %22 = arith.cmpi eq, %arg0, %c0_i32_20 : i32
    %23 = arith.extui %22 : i1 to i32
    %c0_i32_21 = arith.constant 0 : i32
    %24 = arith.cmpi ne, %23, %c0_i32_21 : i32
    scf.if %24 {
      %c0_22 = arith.constant 0 : index
      %c0_23 = arith.constant 0 : index
      %25 = vector.load %arg6[%c0_22, %c0_23] : memref<2x128xf32, #tpu.memory_space<vmem>>, vector<2x128xf32>
      %26 = vector.shape_cast %25 : vector<2x128xf32> to vector<1x2x128xf32>
      %cst_24 = arith.constant dense<0.000000e+00> : vector<1xf32>
      %27 = vector.multi_reduction <add>, %26, %cst_24 [1, 2] : vector<1x2x128xf32> to vector<1xf32>
      %28 = vector.shape_cast %27 : vector<1xf32> to vector<1x1x1xf32>
      %29 = vector.extract %28[0, 0, 0] : f32 from vector<1x1x1xf32>
      %cst_25 = arith.constant 0.000000e+00 : f32
      %30 = arith.addf %cst_25, %29 : f32
      %c0_26 = arith.constant 0 : index
      %c0_27 = arith.constant 0 : index
      %31 = vector.load %arg7[%c0_26, %c0_27] : memref<8x2xf32, #tpu.memory_space<vmem>>, vector<8x2xf32>
      %32 = vector.shape_cast %31 : vector<8x2xf32> to vector<1x8x2xf32>
      %cst_28 = arith.constant dense<0.000000e+00> : vector<1xf32>
      %33 = vector.multi_reduction <add>, %32, %cst_28 [1, 2] : vector<1x8x2xf32> to vector<1xf32>
      %34 = vector.shape_cast %33 : vector<1xf32> to vector<1x1x1xf32>
      %35 = vector.extract %34[0, 0, 0] : f32 from vector<1x1x1xf32>
      %36 = arith.addf %30, %35 : f32
      %c0_29 = arith.constant 0 : index
      %c0_30 = arith.constant 0 : index
      %37 = vector.load %arg8[%c0_29, %c0_30] : memref<12x128xf32, #tpu.memory_space<vmem>>, vector<12x128xf32>
      %38 = vector.shape_cast %37 : vector<12x128xf32> to vector<1x12x128xf32>
      %cst_31 = arith.constant dense<0.000000e+00> : vector<1xf32>
      %39 = vector.multi_reduction <add>, %38, %cst_31 [1, 2] : vector<1x12x128xf32> to vector<1xf32>
      %40 = vector.shape_cast %39 : vector<1xf32> to vector<1x1x1xf32>
      %41 = vector.extract %40[0, 0, 0] : f32 from vector<1x1x1xf32>
      %cst_32 = arith.constant -0.00281776371 : f32
      %42 = arith.mulf %36, %cst_32 : f32
      %cst_33 = arith.constant 6.51041686E-4 : f32
      %43 = arith.mulf %41, %cst_33 : f32
      %c0_34 = arith.constant 0 : index
      %44 = memref.load %arg5[%c0_34] : memref<3xf32, #tpu.memory_space<smem>>
      memref.store %42, %arg5[%c0_34] : memref<3xf32, #tpu.memory_space<smem>>
      %c1 = arith.constant 1 : index
      %45 = memref.load %arg5[%c1] : memref<3xf32, #tpu.memory_space<smem>>
      memref.store %43, %arg5[%c1] : memref<3xf32, #tpu.memory_space<smem>>
      %cst_35 = arith.constant 6.502500e+02 : f32
      %46 = arith.mulf %cst_35, %43 : f32
      %47 = arith.addf %46, %42 : f32
      %c2 = arith.constant 2 : index
      %48 = memref.load %arg5[%c2] : memref<3xf32, #tpu.memory_space<smem>>
      memref.store %47, %arg5[%c2] : memref<3xf32, #tpu.memory_space<smem>>
    } else {
    }
    return
  }
  func.func @transform_0(%arg0: i32) -> (i32, i32) {
    %c0_i32 = arith.constant 0 : i32
    %c0_i32_0 = arith.constant 0 : i32
    return %arg0, %c0_i32 : i32, i32
  }
  func.func @transform_1(%arg0: i32) -> (i32, i32) {
    %c0_i32 = arith.constant 0 : i32
    %c0_i32_0 = arith.constant 0 : i32
    return %arg0, %c0_i32 : i32, i32
  }
  func.func @transform_2(%arg0: i32) -> (i32, i32) {
    %c0_i32 = arith.constant 0 : i32
    %c0_i32_0 = arith.constant 0 : i32
    return %arg0, %c0_i32 : i32, i32
  }
  func.func @transform_3(%arg0: i32) -> (i32, i32) {
    %c0_i32 = arith.constant 0 : i32
    %c0_i32_0 = arith.constant 0 : i32
    return %arg0, %c0_i32 : i32, i32
  }
  func.func @transform_4(%arg0: i32) -> i32 {
    %c0_i32 = arith.constant 0 : i32
    %c0_i32_0 = arith.constant 0 : i32
    return %c0_i32 : i32
  }
}

</mosaic_0001>

<bundles_post_ra>
// kernel: tpu_custom_call.1
= control target key start
LH: loop header
LB: loop body
LE: loop exit
PB: predicated region body
PF: predicated region fallthrough
CT: control target
= control target key end

     0   :  { %9 = vsyncpa [#allocation6], 0  ;;  %s267_s0 = inlined_call_operand.vmem [shape: f32[2,128], index: 0, kind: input, shape index: {}]   ;;  %s268_s1 = inlined_call_operand.vmem [shape: f32[16,2], index: 1, kind: input, shape index: {}]   ;;  %s269_s2 = inlined_call_operand.vmem [shape: f32[12,128], index: 2, kind: input, shape index: {}]   ;;  %s270_s3 = inlined_call_operand.hbm [shape: f32[12,128], index: 3, kind: input, shape index: {}]   ;;  %s271_s4 = inlined_call_operand.hbm [shape: f32[3], index: 4, kind: output, shape index: {}]  }
   0x1   :  { %10 = vsyncpa [#allocation7], 0  ;;  %s193_s15 = smov [#allocation5]   ;;  %s157_s19 = scalar_lea.hbm %s270_s3, 256 }
   0x2   :  { %s22_s16 = sshll.u32 %s193_s15, 4  ;;  %p158_p0 = scmp.ne.s32.totalorder %s270_s3, %s157_s19  ;;  %s23_s16 = int_to_ptr.vmem [resolvable:$true] %s22_s16 }
   0x3   :  { %p161_p1 = scmp.lt.u32.totalorder %s157_s19, %s270_s3 }
   0x5   :  { %p163_p2 = pnand %p161_p1, %p158_p0 }
   0x7   :  { %166 = shalt.err (!%p163_p2)
}
   0x8   :  { %s167_s24 = scalar_lea.vmem %s23_s16, 256  ;;  %p172_p4 = scmp.lt.s32.totalorder %s23_s16, %s23_s16 }
   0x9   :  { %p168_p3 = scmp.ne.s32.totalorder %s23_s16, %s167_s24  ;;  %p173_p5 = scmp.lt.s32.totalorder %s167_s24, %s167_s24 }
   0xb   :  { %p174_p6 = por %p173_p5, %p172_p4 }
   0xd   :  { %p175_p7 = pnand %p174_p6, %p168_p3 }
   0xf   :  { %178 = shalt.err (!%p175_p7)
}
  0x10   :  { %s194_s25 = smov 128   ;;  %s195_s26 = smov 8  }
  0x11   :  { %28 = dma.hbm_to_vmem [thread:$0]  %s270_s3, 256, %s23_s16, [#allocation6], %s194_s25, %s194_s25, %s195_s26  }
  0x12   :  { %189 = dma.done.wait [#allocation6], 256  }
  0x13   :  { %190 = vsyncadd [#allocation6], 4294967040  ;;  %vm37_vm0 = vcmask 15360   ;;  %v196_v0 = vmov 0.0   ;;  %v60_v1 = vld [vmem:[%s269_s2] sm:$0xff]  ;;  %v48_v9 = vld [vmem:[%s268_s1 + $0x8] sm:$0xff] }
  0x14   :  { %40 = vst [vmem:[#allocation4 + $0x8] sm:$0xf] %v196_v0  ;;  %36 = vst [vmem:[#allocation2] sm:$0x3] %v196_v0  ;;  %v61_v2 = vld [vmem:[%s269_s2 + $0x8] sm:$0xf] }
  0x15   :  { %38 = vst.msk [vmem:[#allocation3] sm:$0xff] %vm37_vm0, %v196_v0  ;;  %v62_v3 = vld [vmem:[#allocation5] sm:$0xff]  ;;  %v63_v4 = vld [vmem:[#allocation5 + $0x8] sm:$0xf]  ;;  %vm104_vm1 = vcmask 1043456   ;;  %vm78_vm2 = vcmask 1041408  }
  0x16   :  { %v64_v5 = vsub.f32 %v60_v1, %v62_v3  ;;  %v41_v6 = vld [vmem:[%s267_s0] sm:$0x3]  ;;  %v65_v7 = vsub.f32 %v61_v2, %v63_v4  ;;  %s179_s19 = scalar_lea.hbm %s271_s4, 16 }
  0x17   :  { %151 = vlog2.f32 %v41_v6  ;;  %v47_v8 = vld [vmem:[%s268_s1] sm:$0xff]  ;;  %p180_p8 = scmp.ne.s32.totalorder %s271_s4, %s179_s19  ;;  %p183_p9 = scmp.lt.u32.totalorder %s179_s19, %s271_s4 }
  0x18   :  { %v66_v10 = vmul.f32 %v64_v5, %v64_v5  ;;  %153 = vlog2.f32 %v47_v8  ;;  %v67_v12 = vmul.f32 %v65_v7, %v65_v7 }
  0x19   :  { %155 = vlog2.f32 %v48_v9  ;;  %p185_p10 = pnand %p183_p9, %p180_p8 }
  0x1b   :  { %v69_v11 = vld [vmem:[#allocation4 + $0x8] sm:$0xf]  ;;  %v44_v15 = vld [vmem:[#allocation2] sm:$0x3] }
  0x1c   :  { %v71_v13 = vadd.f32 %v69_v11, %v67_v12  ;;  %v53_v26 = vld [vmem:[#allocation3] sm:$0xff] }
  0x1e   :  { %73 = vst [vmem:[#allocation4 + $0x8] sm:$0xf] %v71_v13 }
  0x21   :  { %v152_v14 = vpop.eup %151 }
  0x22   :  { %v154_v16 = vpop.eup %153  ;;  %v43_v17 = vmul.f32 0.6931472, %v152_v14 }
  0x23   :  { %v156_v18 = vpop.eup %155  ;;  %v50_v19 = vmul.f32 0.6931472, %v154_v16 }
  0x24   :  { %v45_v21 = vadd.f32 %v44_v15, %v43_v17  ;;  %v52_v22 = vmul.f32 0.6931472, %v156_v18 }
  0x25   :  { %v103_v20 = vld [vmem:[#allocation4 + $0x8] sm:$0xf]  ;;  %v55_v24 = vsel %vm37_vm0, %v50_v19, 0.0 }
  0x26   :  { %v105_v23 = vsel %vm104_vm1, %v103_v20, 0.0  ;;  %46 = vst [vmem:[#allocation2] sm:$0x3] %v45_v21  ;;  %v56_v27 = vsel %vm37_vm0, %v52_v22, 0.0 }
  0x27   :  { %v106_v25 = vadd.f32 %v105_v23, %v66_v10  ;;  %v57_v28 = vadd.f32 %v56_v27, %v55_v24 }
  0x29   :  { %107 = vadd.xlane.f32.xlu1 %v106_v25  ;;  %v58_v29 = vadd.f32 %v57_v28, %v53_v26 }
  0x2b   :  { %59 = vst.msk [vmem:[#allocation3] sm:$0xff] %vm37_vm0, %v58_v29 }
  0x2d   :  { %v77_v30 = vld [vmem:[#allocation2] sm:$0x3] }
  0x2e   :  { %v79_v31 = vsel %vm78_vm2, %v77_v30, 0.0 }
  0x2f   :  { %80 = vadd.xlane.f32.xlu0 %v79_v31 }
  0x32   :  { %v90_v32 = vld [vmem:[#allocation3] sm:$0xff] }
  0x33   :  { %v91_v33 = vsel %vm37_vm0, %v90_v32, 0.0 }
  0x34   :  { %92 = vadd.xlane.f32.xlu0 %v91_v33 }
  0xb6   :  { %v108_v34 = vpop.xlane.xlu1 %107 }
  0xb7   :  { %v109_v35 = vrot.slane %v108_v34, 4 }
  0xb9   :  { %v110_v37 = vadd.f32 %v109_v35, %v108_v34 }
  0xbb   :  { %v111_v40 = vrot.slane %v110_v37, 2 }
  0xbc   :  { %v81_v36 = vpop.xlane.xlu0 %80 }
  0xbd   :  { %v82_v38 = vrot.slane %v81_v36, 4  ;;  %v112_v46 = vadd.f32 %v111_v40, %v110_v37 }
  0xbf   :  { %v83_v39 = vadd.f32 %v82_v38, %v81_v36  ;;  %v113_v51 = vrot.slane %v112_v46, 1 }
  0xc1   :  { %v84_v41 = vrot.slane %v83_v39, 2  ;;  %v93_v42 = vpop.xlane.xlu0 %92  ;;  %v114_v54 = vadd.f32 %v113_v51, %v112_v46 }
  0xc2   :  { %v94_v43 = vrot.slane %v93_v42, 4 }
  0xc3   :  { %v85_v44 = vadd.f32 %v84_v41, %v83_v39 }
  0xc4   :  { %v95_v45 = vadd.f32 %v94_v43, %v93_v42 }
  0xc5   :  { %v86_v47 = vrot.slane %v85_v44, 1 }
  0xc6   :  { %v96_v48 = vrot.slane %v95_v45, 2 }
  0xc7   :  { %v87_v49 = vadd.f32 %v86_v47, %v85_v44 }
  0xc8   :  { %v97_v50 = vadd.f32 %v96_v48, %v95_v45 }
  0xc9   :  { %140 = vpush %v87_v49 }
  0xca   :  { %v98_v52 = vrot.slane %v97_v50, 1 }
  0xcc   :  { %v99_v53 = vadd.f32 %v98_v52, %v97_v50 }
  0xce   :  { %142 = vpush %v99_v53 }
  0xcf   :  { %144 = vpush %v114_v54 }
  0xfa   :  { %s141_s0 = spop %140 }
  0xff   :  { %s143_s1 = spop %142 }
 0x100   :  { %s101_s2 = sadd.f32 %s143_s1, %s141_s0  ;;  %s145_s12 = spop %144 }
 0x101   :  { %s117_s13 = smul.f32 0.0006510417, %s145_s12 }
 0x102   :  { %s116_s14 = smul.f32 -0.0028177637, %s101_s2 }
 0x103   :  { %121 = sst [smem:[#allocation8 + $0x1]] %s117_s13  ;;  %s122_s15 = smul.f32 650.25, %s117_s13 }
 0x104   :  { %119 = sst [smem:[#allocation8]] %s116_s14 }
 0x105   :  { %s123_s16 = sadd.f32 %s122_s15, %s116_s14 }
 0x107   :  { %125 = sst [smem:[#allocation8 + $0x2]] %s123_s16 }
 0x108   :  { %188 = shalt.err (!%p185_p10)
}
 0x109   :  { %s197_s24 = smov [#allocation8]  }
 0x10a   :  { %133 = dma.smem_to_hbm %s197_s24, 16, %s271_s4, [#allocation7]  }
 0x10b   :  { %191 = dma.done.wait [#allocation7], 16  }
 0x10c   :  { %192 = vsyncadd [#allocation7], 4294967280 }
 0x10d   :  { %137 = sfence }
 0x10e   :  { %138 = vsyncpa [#allocation6], 1 }
 0x10f   :  { %139 = vsyncpa [#allocation7], 1 }

</bundles_post_ra>
